<compile_context>
chip_gen: v5e
topology: v5e:2x2
jax: 0.10.0
libtpu: 0.0.40
codegen_flags: <defaults>
</compile_context>

<pallas_src>
import jax
import jax.numpy as jnp
from jax.experimental import pallas as pl
from jax.experimental.pallas import tpu as pltpu

WEIGHTS_INITIALIZATION_STD = 0.5


def gaussian_mlp_kernel(x_ref, w1_ref, b1_ref, w2_ref, b2_ref, out_ref):
    # x:  (bm, input_dim)
    # w1: (input_dim, hidden)     b1: (1, hidden)
    # w2: (hidden, 2*output_dim)  b2: (1, 2*output_dim)
    # out: (bm, 2*output_dim)  -- first half mean, second half softplus(var)+1e-6
    x = x_ref[...]
    h = jnp.dot(x, w1_ref[...], preferred_element_type=jnp.float32) + b1_ref[...]
    h = jnp.maximum(h, 0.0)                                   # ReLU
    out = jnp.dot(h, w2_ref[...], preferred_element_type=jnp.float32) + b2_ref[...]

    d = out_ref.shape[-1] // 2                                # output_dim (static)
    # Lane-dense fused epilogue: mean columns pass through, variance columns get a
    # numerically stable softplus (max(v,0) + log1p(exp(-|v|))) + 1e-6. One unmasked,
    # contiguous store instead of two width-d masked partial stores.
    col = jax.lax.broadcasted_iota(jnp.int32, out.shape, 1)
    softplus = jnp.maximum(out, 0.0) + jnp.log1p(jnp.exp(-jnp.abs(out)))
    out_ref[...] = jnp.where(col < d, out, softplus + 1e-6).astype(out_ref.dtype)


def gaussian_mlp(x, w1, b1, w2, b2, output_dim, *, max_bm=512):
    B, input_dim = x.shape
    hidden = w1.shape[1]
    two_d = 2 * output_dim

    # Batch tile: as large as is useful (per-grid-step overhead ~0.35 us) but capped so
    # double-buffered activations stay tiny even against v5e's 16 MiB scoped default and
    # v7x's 64 MiB physical VMEM. At bm=512 the activation footprint is ~100 KiB.
    bm = min(B, max_bm)
    grid = (pl.cdiv(B, bm),)  # robust: partial tail block is masked, no rows dropped

    b1_2d = b1.reshape(1, hidden)
    b2_2d = b2.reshape(1, two_d)

    out = pl.pallas_call(
        gaussian_mlp_kernel,
        out_shape=jax.ShapeDtypeStruct((B, two_d), jnp.float32),
        grid_spec=pltpu.PrefetchScalarGridSpec(
            num_scalar_prefetch=0,
            grid=grid,
            in_specs=[
                pl.BlockSpec((bm, input_dim), lambda i: (i, 0)),
                # Weights/biases pinned at block (0, 0): DMA elided across grid steps,
                # they stay resident in VMEM for the whole call.
                pl.BlockSpec((input_dim, hidden), lambda i: (0, 0)),
                pl.BlockSpec((1, hidden), lambda i: (0, 0)),
                pl.BlockSpec((hidden, two_d), lambda i: (0, 0)),
                pl.BlockSpec((1, two_d), lambda i: (0, 0)),
            ],
            out_specs=pl.BlockSpec((bm, two_d), lambda i: (i, 0)),
        ),
        compiler_params=pltpu.CompilerParams(
            # Batch tiles are independent -> shard across TensorCores (v7x megacore).
            dimension_semantics=("parallel",),
        ),
    )(x, w1, b1_2d, w2, b2_2d)

    # Split mean / variance in the wrapper so the kernel's output stays lane-dense.
    mean = out[:, :output_dim]
    variance = out[:, output_dim:]
    return mean, variance


def reference_mlp(x, w1, b1, w2, b2, output_dim):
    h = jnp.maximum(x @ w1 + b1, 0.0)
    out = h @ w2 + b2
    mean = out[:, :output_dim]
    var = jax.nn.softplus(out[:, output_dim:]) + 1e-6
    return mean, var


if __name__ == "__main__":
    # Small shapes consistent with the module's forward: x (batch, input_dim)
    batch, input_dim, hidden_units, output_dim = 8, 16, 32, 4

    key = jax.random.PRNGKey(0)
    k_x, k_w1, k_b1, k_w2, k_b2 = jax.random.split(key, 5)

    x = jax.random.normal(k_x, (batch, input_dim), dtype=jnp.float32)

    # Deterministic init mirroring the module:
    #   weights ~ Normal(0, WEIGHTS_INITIALIZATION_STD)
    #   biases  ~ default nn.Linear init: Uniform(-1/sqrt(fan_in), 1/sqrt(fan_in))
    w1 = WEIGHTS_INITIALIZATION_STD * jax.random.normal(
        k_w1, (input_dim, hidden_units), dtype=jnp.float32)
    bound1 = 1.0 / jnp.sqrt(input_dim)
    b1 = jax.random.uniform(k_b1, (hidden_units,), minval=-bound1, maxval=bound1,
                            dtype=jnp.float32)

    w2 = WEIGHTS_INITIALIZATION_STD * jax.random.normal(
        k_w2, (hidden_units, 2 * output_dim), dtype=jnp.float32)
    bound2 = 1.0 / jnp.sqrt(hidden_units)
    b2 = jax.random.uniform(k_b2, (2 * output_dim,), minval=-bound2, maxval=bound2,
                            dtype=jnp.float32)

    mean, variance = gaussian_mlp(x, w1, b1, w2, b2, output_dim)
    jax.block_until_ready((mean, variance))

    # Sanity-check against a pure-JAX reference of the same forward pass.
    mean_ref, var_ref = reference_mlp(x, w1, b1, w2, b2, output_dim)
    assert mean.shape == (batch, output_dim) and variance.shape == (batch, output_dim)
    assert jnp.allclose(mean, mean_ref, atol=1e-5, rtol=1e-5)
    assert jnp.allclose(variance, var_ref, atol=1e-5, rtol=1e-5)
    assert bool(jnp.all(variance > 0.0))

    print("KERNEL_OK")
</pallas_src>

<mosaic_0001>
module attributes {stable_mosaic.version = 11 : i64} {
  func.func @gaussian_mlp_kernel(%arg0: i32, %arg1: memref<8x16xf32, #tpu.memory_space<vmem>>, %arg2: memref<16x32xf32, #tpu.memory_space<vmem>>, %arg3: memref<1x32xf32, #tpu.memory_space<vmem>>, %arg4: memref<32x8xf32, #tpu.memory_space<vmem>>, %arg5: memref<1x8xf32, #tpu.memory_space<vmem>>, %arg6: memref<8x8xf32, #tpu.memory_space<vmem>>) attributes {dimension_semantics = [#tpu.dimension_semantics<parallel>], iteration_bounds = array<i64: 1>, scalar_prefetch = 0 : i64, scratch_operands = 0 : i64, tpu.core_type = #tpu.core_type<tc>, window_params = [{transform_indices = @transform_0, window_bounds = array<i64: 8, 16>}, {pipeline_mode = #tpu.pipeline_mode<synchronous>, transform_indices = @transform_1, window_bounds = array<i64: 16, 32>}, {pipeline_mode = #tpu.pipeline_mode<synchronous>, transform_indices = @transform_2, window_bounds = array<i64: 1, 32>}, {pipeline_mode = #tpu.pipeline_mode<synchronous>, transform_indices = @transform_3, window_bounds = array<i64: 32, 8>}, {pipeline_mode = #tpu.pipeline_mode<synchronous>, transform_indices = @transform_4, window_bounds = array<i64: 1, 8>}, {transform_indices = @transform_5, window_bounds = array<i64: 8, 8>}]} {
    %c0 = arith.constant 0 : index
    %c0_0 = arith.constant 0 : index
    %0 = vector.load %arg1[%c0, %c0_0] : memref<8x16xf32, #tpu.memory_space<vmem>>, vector<8x16xf32>
    %c0_1 = arith.constant 0 : index
    %c0_2 = arith.constant 0 : index
    %1 = vector.load %arg2[%c0_1, %c0_2] : memref<16x32xf32, #tpu.memory_space<vmem>>, vector<16x32xf32>
    %cst = arith.constant dense<0.000000e+00> : vector<8x32xf32>
    %2 = tpu.matmul %0, %1, %cst {dimension_numbers = #tpu.dot_dimension_numbers<[1], [0], [0], [1], [0, 0, 1, 1], [], []>} : vector<8x16xf32>, vector<16x32xf32>, vector<8x32xf32> -> vector<8x32xf32>
    %c0_3 = arith.constant 0 : index
    %c0_4 = arith.constant 0 : index
    %3 = vector.load %arg3[%c0_3, %c0_4] : memref<1x32xf32, #tpu.memory_space<vmem>>, vector<1x32xf32>
    %4 = vector.broadcast %3 : vector<1x32xf32> to vector<8x32xf32>
    %5 = arith.addf %2, %4 : vector<8x32xf32>
    %cst_5 = arith.constant 0.000000e+00 : f32
    %6 = vector.broadcast %cst_5 : f32 to vector<8x32xf32>
    %7 = arith.maximumf %5, %6 : vector<8x32xf32>
    %c0_6 = arith.constant 0 : index
    %c0_7 = arith.constant 0 : index
    %8 = vector.load %arg4[%c0_6, %c0_7] : memref<32x8xf32, #tpu.memory_space<vmem>>, vector<32x8xf32>
    %cst_8 = arith.constant dense<0.000000e+00> : vector<8x8xf32>
    %9 = tpu.matmul %7, %8, %cst_8 {dimension_numbers = #tpu.dot_dimension_numbers<[1], [0], [0], [1], [0, 0, 1, 1], [], []>} : vector<8x32xf32>, vector<32x8xf32>, vector<8x8xf32> -> vector<8x8xf32>
    %c0_9 = arith.constant 0 : index
    %c0_10 = arith.constant 0 : index
    %10 = vector.load %arg5[%c0_9, %c0_10] : memref<1x8xf32, #tpu.memory_space<vmem>>, vector<1x8xf32>
    %11 = vector.broadcast %10 : vector<1x8xf32> to vector<8x8xf32>
    %12 = arith.addf %9, %11 : vector<8x8xf32>
    %13 = tpu.iota {dimensions = array<i32: 1>} : vector<8x8xi32>
    %cst_11 = arith.constant 0.000000e+00 : f32
    %14 = vector.broadcast %cst_11 : f32 to vector<8x8xf32>
    %15 = arith.maximumf %12, %14 : vector<8x8xf32>
    %16 = math.absf %12 : vector<8x8xf32>
    %cst_12 = arith.constant 0.000000e+00 : f32
    %17 = vector.broadcast %cst_12 : f32 to vector<8x8xf32>
    %18 = arith.subf %17, %16 : vector<8x8xf32>
    %19 = math.exp %18 : vector<8x8xf32>
    %20 = math.log1p %19 : vector<8x8xf32>
    %21 = arith.addf %15, %20 : vector<8x8xf32>
    %c4_i32 = arith.constant 4 : i32
    %22 = vector.broadcast %c4_i32 : i32 to vector<8x8xi32>
    %23 = arith.cmpi slt, %13, %22 : vector<8x8xi32>
    %cst_13 = arith.constant 9.99999997E-7 : f32
    %24 = vector.broadcast %cst_13 : f32 to vector<8x8xf32>
    %25 = arith.addf %21, %24 : vector<8x8xf32>
    %26 = arith.select %23, %12, %25 : vector<8x8xi1>, vector<8x8xf32>
    %c0_14 = arith.constant 0 : index
    %c0_15 = arith.constant 0 : index
    %27 = vector.load %arg6[%c0_14, %c0_15] : memref<8x8xf32, #tpu.memory_space<vmem>>, vector<8x8xf32>
    tpu.vector_store %arg6[%c0_14, %c0_15], %26 {strides = array<i32>} : memref<8x8xf32, #tpu.memory_space<vmem>>, vector<8x8xf32>,
    return
  }
  func.func @transform_0(%arg0: i32) -> (i32, i32) {
    %c0_i32 = arith.constant 0 : i32
    %c0_i32_0 = arith.constant 0 : i32
    return %arg0, %c0_i32 : i32, i32
  }
  func.func @transform_1(%arg0: i32) -> (i32, i32) {
    %c0_i32 = arith.constant 0 : i32
    %c0_i32_0 = arith.constant 0 : i32
    %c0_i32_1 = arith.constant 0 : i32
    return %c0_i32, %c0_i32_0 : i32, i32
  }
  func.func @transform_2(%arg0: i32) -> (i32, i32) {
    %c0_i32 = arith.constant 0 : i32
    %c0_i32_0 = arith.constant 0 : i32
    %c0_i32_1 = arith.constant 0 : i32
    return %c0_i32, %c0_i32_0 : i32, i32
  }
  func.func @transform_3(%arg0: i32) -> (i32, i32) {
    %c0_i32 = arith.constant 0 : i32
    %c0_i32_0 = arith.constant 0 : i32
    %c0_i32_1 = arith.constant 0 : i32
    return %c0_i32, %c0_i32_0 : i32, i32
  }
  func.func @transform_4(%arg0: i32) -> (i32, i32) {
    %c0_i32 = arith.constant 0 : i32
    %c0_i32_0 = arith.constant 0 : i32
    %c0_i32_1 = arith.constant 0 : i32
    return %c0_i32, %c0_i32_0 : i32, i32
  }
  func.func @transform_5(%arg0: i32) -> (i32, i32) {
    %c0_i32 = arith.constant 0 : i32
    %c0_i32_0 = arith.constant 0 : i32
    return %arg0, %c0_i32 : i32, i32
  }
}

</mosaic_0001>

<bundles_post_ra>
// kernel: tpu_custom_call.1
= control target key start
LH: loop header
LB: loop body
LE: loop exit
PB: predicated region body
PF: predicated region fallthrough
CT: control target
= control target key end

     0   :  { %vm28_vm0 = vcmask 130048   ;;  %s219_s0 = inlined_call_operand.vmem [shape: f32[8,16], index: 0, kind: input, shape index: {}]   ;;  %s220_s1 = inlined_call_operand.vmem [shape: f32[16,32], index: 1, kind: input, shape index: {}]   ;;  %s221_s2 = inlined_call_operand.vmem [shape: f32[1,32], index: 2, kind: input, shape index: {}]   ;;  %s222_s3 = inlined_call_operand.vmem [shape: f32[32,8], index: 3, kind: input, shape index: {}]   ;;  %s223_s4 = inlined_call_operand.vmem [shape: f32[1,8], index: 4, kind: input, shape index: {}]   ;;  %s224_s5 = inlined_call_operand.hbm [shape: f32[8,8], index: 5, kind: output, shape index: {}]  }
   0x1   :  { %v23_v0 = vld [vmem:[%s220_s1 + $0x8] sm:$0xff]  ;;  %v22_v1 = vld [vmem:[%s220_s1] sm:$0xff]  ;;  %v56_v3 = vld [vmem:[%s222_s3 + $0x18] sm:$0xff] }
   0x2   :  { %46 = vmatpush.msra.mxu0 %v23_v0  ;;  %v21_v2 = vld [vmem:[%s219_s0] sm:$0xff]  ;;  %77 = vmatpush.msra.mxu1 %v56_v3 }
   0x3   :  { %10 = vsyncpa [#allocation3], 0  ;;  %v55_v4 = vld [vmem:[%s222_s3 + $0x10] sm:$0xff]  ;;  %v54_v5 = vld [vmem:[%s222_s3 + $0x8] sm:$0xff]  ;;  %vm61_vm1 = vcmask 261120   ;;  %v85_v21 = vlaneseq  ;;  %s114_s10 = sshll.u32 %s224_s5, 4  ;;  %s115_s10 = int_to_ptr.hbm [resolvable:$true] %s114_s10 }
   0x4   :  { %47 = vmatpush.msra.mxu0 %v22_v1  ;;  %78 = vmatpush.msra.mxu1 %v55_v4  ;;  %v53_v6 = vld [vmem:[%s222_s3] sm:$0xff]  ;;  %vm105_vm4 = vcmask 64512  }
   0x5   :  { %123 = vmatmul.msk.f32.vlgmr.msra.gmra.mxu0 %vm28_vm0, %v21_v2  ;;  %v126_v7 = vld [vmem:[%s221_s2] ss:$0 sm:$0xff]  ;;  %v86_v26 = vand.u32 127, %v85_v21  ;;  %s158_s2 = smov [#allocation2]  }
   0x6   :  { %79 = vmatpush.msra.mxu1 %v54_v5  ;;  %v127_v11 = vld [vmem:[%s223_s4] ss:$0 sm:$0xff]  ;;  %s112_s3 = sshll.u32 %s158_s2, 4  ;;  %s113_s3 = int_to_ptr.vmem [resolvable:$true] %s112_s3 }
   0x7   :  { %vm102_vm3 = vcmp.lt.s32.totalorder %v86_v26, 4 }
   0x8   :  { %80 = vmatpush.msra.mxu1 %v53_v6 }
  0x82   :  { %v49_v8 = vpop.f32.mrf.mxu0 }
  0x83   :  { %v50_v9 = vadd.f32 %v126_v7, %v49_v8 }
  0x85   :  { %v52_v10 = vmax.f32 %v50_v9, 0.0 }
  0x87   :  { %124 = vmatmul.msk.f32.vlgmr.msra.gmra.mxu1 %vm61_vm1, %v52_v10 }
 0x104   :  { %v82_v12 = vpop.f32.mrf.mxu1 }
 0x105   :  { %v83_v13 = vadd.f32 %v127_v11, %v82_v12 }
 0x107   :  { %v88_v14 = vand.u32 2147483647, %v83_v13  ;;  %v87_v27 = vmax.f32 %v83_v13, 0.0 }
 0x109   :  { %v89_v15 = vsub.f32 0.0, %v88_v14 }
 0x10b   :  { %v90_v16 = vmul.f32 1.442695, %v89_v15 }
 0x10d   :  { %128 = vpow2.f32 %v90_v16 }
 0x113   :  { %v129_v17 = vpop.eup %128 }
 0x114   :  { %v92_v18 = vadd.f32 1.0, %v129_v17  ;;  %v95_v19 = vmul.f32 -0.5, %v129_v17  ;;  %v98_v22 = vand.u32 2147483647, %v129_v17 }
 0x116   :  { %130 = vlog2.f32 %v92_v18  ;;  %v96_v20 = vadd.f32 1.0, %v95_v19  ;;  %vm99_vm2 = vcmp.lt.f32.partialorder %v98_v22, 0.0004427343 }
 0x118   :  { %v97_v25 = vmul.f32 %v129_v17, %v96_v20 }
 0x11c   :  { %v131_v23 = vpop.eup %130 }
 0x11d   :  { %v94_v24 = vmul.f32 0.6931472, %v131_v23 }
 0x11f   :  { %v100_v28 = vsel %vm99_vm2, %v97_v25, %v94_v24 }
 0x120   :  { %v101_v29 = vadd.f32 %v100_v28, %v87_v27 }
 0x122   :  { %v103_v30 = vadd.f32 1e-06, %v101_v29 }
 0x124   :  { %v104_v31 = vsel %vm102_vm3, %v83_v13, %v103_v30 }
 0x125   :  { %106 = vst.msk [vmem:[#allocation2] sm:$0xff] %vm105_vm4, %v104_v31 }
 0x126   :  { %117 = dma.vmem_to_hbm [thread:$0]  %s113_s3, 128, %s115_s10, [#allocation3]  }
 0x127   :  { %156 = dma.done.wait [#allocation3], 128  }
 0x128   :  { %157 = vsyncadd [#allocation3], 4294967168 }
 0x129   :  { %122 = vsyncpa [#allocation3], 1 }

</bundles_post_ra>
